<compile_context>
chip_gen: v6e
topology: v6e:2x2x1
jax: 0.10.0
libtpu: 0.0.40
codegen_flags: <defaults>
</compile_context>

<pallas_src>
import jax
import jax.numpy as jnp
from jax.experimental import pallas as pl
from jax.experimental.pallas import tpu as pltpu


def _round_up(a, m):
    return ((a + m - 1) // m) * m


# --------------------------------------------------------------------------
# Pallas kernel: full Multi_LP forward for one batch tile
# --------------------------------------------------------------------------
def make_multi_lp_kernel(layout):
    """layout: name -> (row_start, rows, cols) into the packed weight slab.
    All values are Python ints, so every slice below is static."""

    def kernel(x_ref, w_ref, o_ref):
        def wslice(name):
            r0, nr, nc = layout[name]
            return w_ref[r0:r0 + nr, 0:nc]

        relu = lambda v: jnp.maximum(v, 0.0)
        dot = lambda a, b: jnp.dot(a, b, preferred_element_type=jnp.float32)

        x = x_ref[...]

        # block0 = relu(fc2(relu(fc1(x))))
        h0 = relu(dot(x, wslice("w01")) + wslice("b01"))
        block0 = relu(dot(h0, wslice("w02")) + wslice("b02"))

        # One fused matmul for everything that consumes block0:
        #   cols 0:8   -> level1_fc1 (w11)
        #   cols 8:16  -> level2_fc1, block0 part (w21a)
        #   cols 16:24 -> level3_fc1, block0 part (w31a)
        p0 = dot(block0, wslice("wb0"))                      # (tb, 24)

        # level1 = relu(fc3(relu(fc2(relu(fc1(block0))))))
        h1 = relu(p0[:, 0:8] + wslice("b11"))
        h1 = relu(dot(h1, wslice("w12")) + wslice("b12"))
        level1 = relu(dot(h1, wslice("w13")) + wslice("b13"))

        # One fused matmul for everything that consumes level1:
        #   cols 0:8  -> level2_fc1, level1 part (w21b)
        #   cols 8:16 -> level3_fc1, level1 part (w31b)
        p1 = dot(level1, wslice("wl1"))                      # (tb, 16)

        # level2 = relu(fc2(relu(fc1(cat[block0, level1]))))
        h2 = relu(p0[:, 8:16] + p1[:, 0:8] + wslice("b21"))
        level2 = relu(dot(h2, wslice("w22")) + wslice("b22"))

        # level3 = relu(fc2(relu(fc1(cat[block0, level1, level2]))))
        h3 = relu(p0[:, 16:24] + p1[:, 8:16]
                  + dot(level2, wslice("w31c")) + wslice("b31"))
        level3 = relu(dot(h3, wslice("w32")) + wslice("b32"))

        # Single lane-dense output slab: [level1 | level2 | level3] = 9 lanes.
        o_ref[...] = jnp.concatenate([level1, level2, level3], axis=1)

    return kernel


# --------------------------------------------------------------------------
# Parameter construction (deterministic, PyTorch-Linear-style init)
# --------------------------------------------------------------------------
def init_linear(key, in_dim, out_dim):
    """Returns (W_T, b) with W_T shape (in, out), b shape (1, out)."""
    kw, kb = jax.random.split(key)
    bound = 1.0 / (in_dim ** 0.5)
    w = jax.random.uniform(kw, (out_dim, in_dim), jnp.float32, -bound, bound)
    b = jax.random.uniform(kb, (out_dim,), jnp.float32, -bound, bound)
    return w.T, b.reshape(1, out_dim)


def make_params(input_dim, key):
    keys = jax.random.split(key, 9)
    raw = {}
    raw["w01"], raw["b01"] = init_linear(keys[0], input_dim, 64)
    raw["w02"], raw["b02"] = init_linear(keys[1], 64, 8)
    raw["w11"], raw["b11"] = init_linear(keys[2], 8, 8)
    raw["w12"], raw["b12"] = init_linear(keys[3], 8, 8)
    raw["w13"], raw["b13"] = init_linear(keys[4], 8, 2)
    raw["w21"], raw["b21"] = init_linear(keys[5], 8 + 2, 8)
    raw["w22"], raw["b22"] = init_linear(keys[6], 8, 3)
    raw["w31"], raw["b31"] = init_linear(keys[7], 8 + 2 + 3, 8)
    raw["w32"], raw["b32"] = init_linear(keys[8], 8, 4)
    return raw


def pack_params(raw):
    """Pack all weights/biases (with same-LHS fusion) into one f32 slab of
    shape (R, 128); rows are padded to multiples of 8 so every kernel-side
    slice is sublane-aligned.  Returns (slab, layout)."""
    w21, w31 = raw["w21"], raw["w31"]
    entries = {
        "w01": raw["w01"], "b01": raw["b01"],
        "w02": raw["w02"], "b02": raw["b02"],
        # fused same-LHS weights
        "wb0": jnp.concatenate([raw["w11"], w21[:8], w31[:8]], axis=1),   # (8, 24)
        "b11": raw["b11"],
        "w12": raw["w12"], "b12": raw["b12"],
        "w13": raw["w13"], "b13": raw["b13"],
        "wl1": jnp.concatenate([w21[8:10], w31[8:10]], axis=1),           # (2, 16)
        "b21": raw["b21"],
        "w22": raw["w22"], "b22": raw["b22"],
        "w31c": w31[10:13], "b31": raw["b31"],
        "w32": raw["w32"], "b32": raw["b32"],
    }
    LANE = 128
    layout = {}
    chunks = []
    r = 0
    for name, a in entries.items():
        nr, nc = a.shape
        nr_pad = _round_up(nr, 8)
        layout[name] = (r, nr, nc)
        pad = jnp.zeros((nr_pad, LANE), jnp.float32)
        pad = pad.at[:nr, :nc].set(a.astype(jnp.float32))
        chunks.append(pad)
        r += nr_pad
    slab = jnp.concatenate(chunks, axis=0)
    return slab, layout


# --------------------------------------------------------------------------
# Wrapper
# --------------------------------------------------------------------------
def _choose_tile(B, tile_b):
    """Pick (tile, padded_batch).  Tile is a multiple of 8 capped at tile_b.
    Split into >=2 grid steps (v7x megacore) only when the batch is large
    enough that the per-grid-step overhead is amortized."""
    Bp0 = _round_up(max(B, 8), 8)
    tb = _round_up(min(tile_b, Bp0), 8)
    if Bp0 // tb < 2 and Bp0 >= 512:
        tb = _round_up(pl.cdiv(Bp0, 2), 8)
    Bp = _round_up(Bp0, tb)
    return tb, Bp


def multi_lp_forward(x, slab, layout, tile_b=1024):
    B, D = x.shape
    tb, Bp = _choose_tile(B, tile_b)
    if Bp != B:
        x = jnp.pad(x, ((0, Bp - B), (0, 0)))
    grid = (Bp // tb,)

    kernel = make_multi_lp_kernel(layout)
    out = pl.pallas_call(
        kernel,
        out_shape=jax.ShapeDtypeStruct((Bp, 9), jnp.float32),
        grid_spec=pltpu.PrefetchScalarGridSpec(
            num_scalar_prefetch=0,
            grid=grid,
            in_specs=[
                pl.BlockSpec((tb, D), lambda i: (i, 0)),
                # whole weight slab, constant block index -> stays resident
                pl.BlockSpec(slab.shape, lambda i: (0, 0)),
            ],
            out_specs=pl.BlockSpec((tb, 9), lambda i: (i, 0)),
        ),
        compiler_params=pltpu.CompilerParams(
            dimension_semantics=("parallel",)),
    )(x, slab)

    out = out[:B]
    return out[:, 0:2], out[:, 2:5], out[:, 5:9]


# --------------------------------------------------------------------------
# Plain-JAX reference (mirrors the PyTorch module exactly)
# --------------------------------------------------------------------------
def multi_lp_ref(x, raw):
    relu = lambda v: jnp.maximum(v, 0.0)
    block0 = relu(relu(x @ raw["w01"] + raw["b01"]) @ raw["w02"] + raw["b02"])
    h1 = relu(block0 @ raw["w11"] + raw["b11"])
    h1 = relu(h1 @ raw["w12"] + raw["b12"])
    level1 = relu(h1 @ raw["w13"] + raw["b13"])
    l2_in = jnp.concatenate([block0, level1], axis=1)
    level2 = relu(relu(l2_in @ raw["w21"] + raw["b21"]) @ raw["w22"] + raw["b22"])
    l3_in = jnp.concatenate([block0, level1, level2], axis=1)
    level3 = relu(relu(l3_in @ raw["w31"] + raw["b31"]) @ raw["w32"] + raw["b32"])
    return level1, level2, level3


if __name__ == "__main__":
    key = jax.random.PRNGKey(0)
    kx, kp = jax.random.split(key)

    B, INPUT_DIM = 8, 16
    x = jax.random.normal(kx, (B, INPUT_DIM), jnp.float32)
    raw = make_params(INPUT_DIM, kp)
    slab, layout = pack_params(raw)

    # single-tile path (B = 8 -> grid = (1,))
    l1, l2, l3 = multi_lp_forward(x, slab, layout)
    jax.block_until_ready((l1, l2, l3))
    r1, r2, r3 = multi_lp_ref(x, raw)
    assert l1.shape == (B, 2) and l2.shape == (B, 3) and l3.shape == (B, 4)
    assert jnp.allclose(l1, r1, atol=1e-5)
    assert jnp.allclose(l2, r2, atol=1e-5)
    assert jnp.allclose(l3, r3, atol=1e-5)

    # multi-tile path (force grid = (2,) with a small tile), plus batch padding
    B2 = 44
    x2 = jax.random.normal(jax.random.PRNGKey(1), (B2, INPUT_DIM), jnp.float32)
    m1, m2, m3 = multi_lp_forward(x2, slab, layout, tile_b=24)
    jax.block_until_ready((m1, m2, m3))
    s1, s2, s3 = multi_lp_ref(x2, raw)
    assert m1.shape == (B2, 2) and m2.shape == (B2, 3) and m3.shape == (B2, 4)
    assert jnp.allclose(m1, s1, atol=1e-5)
    assert jnp.allclose(m2, s2, atol=1e-5)
    assert jnp.allclose(m3, s3, atol=1e-5)

    print("KERNEL_OK")
</pallas_src>

<mosaic_0001>
module attributes {stable_mosaic.version = 11 : i64} {
  func.func @kernel(%arg0: i32, %arg1: memref<8x16xf32, #tpu.memory_space<vmem>>, %arg2: memref<208x128xf32, #tpu.memory_space<vmem>>, %arg3: memref<8x9xf32, #tpu.memory_space<vmem>>) attributes {dimension_semantics = [#tpu.dimension_semantics<parallel>], iteration_bounds = array<i64: 1>, scalar_prefetch = 0 : i64, scratch_operands = 0 : i64, tpu.core_type = #tpu.core_type<tc>, window_params = [{transform_indices = @transform_0, window_bounds = array<i64: 8, 16>}, {pipeline_mode = #tpu.pipeline_mode<synchronous>, transform_indices = @transform_1, window_bounds = array<i64: 208, 128>}, {transform_indices = @transform_2, window_bounds = array<i64: 8, 9>}]} {
    %c0 = arith.constant 0 : index
    %c0_0 = arith.constant 0 : index
    %0 = vector.load %arg1[%c0, %c0_0] : memref<8x16xf32, #tpu.memory_space<vmem>>, vector<8x16xf32>
    %c0_1 = arith.constant 0 : index
    %c0_2 = arith.constant 0 : index
    %1 = vector.load %arg2[%c0_1, %c0_2] : memref<208x128xf32, #tpu.memory_space<vmem>>, vector<16x64xf32>
    %cst = arith.constant dense<0.000000e+00> : vector<8x64xf32>
    %2 = tpu.matmul %0, %1, %cst {dimension_numbers = #tpu.dot_dimension_numbers<[1], [0], [0], [1], [0, 0, 1, 1], [], []>} : vector<8x16xf32>, vector<16x64xf32>, vector<8x64xf32> -> vector<8x64xf32>
    %c16 = arith.constant 16 : index
    %c0_3 = arith.constant 0 : index
    %3 = vector.load %arg2[%c16, %c0_3] : memref<208x128xf32, #tpu.memory_space<vmem>>, vector<1x64xf32>
    %4 = vector.broadcast %3 : vector<1x64xf32> to vector<8x64xf32>
    %5 = arith.addf %2, %4 : vector<8x64xf32>
    %cst_4 = arith.constant 0.000000e+00 : f32
    %6 = vector.broadcast %cst_4 : f32 to vector<8x64xf32>
    %7 = arith.maximumf %5, %6 : vector<8x64xf32>
    %c24 = arith.constant 24 : index
    %c0_5 = arith.constant 0 : index
    %8 = vector.load %arg2[%c24, %c0_5] : memref<208x128xf32, #tpu.memory_space<vmem>>, vector<64x8xf32>
    %cst_6 = arith.constant dense<0.000000e+00> : vector<8x8xf32>
    %9 = tpu.matmul %7, %8, %cst_6 {dimension_numbers = #tpu.dot_dimension_numbers<[1], [0], [0], [1], [0, 0, 1, 1], [], []>} : vector<8x64xf32>, vector<64x8xf32>, vector<8x8xf32> -> vector<8x8xf32>
    %c88 = arith.constant 88 : index
    %c0_7 = arith.constant 0 : index
    %10 = vector.load %arg2[%c88, %c0_7] : memref<208x128xf32, #tpu.memory_space<vmem>>, vector<1x8xf32>
    %11 = vector.broadcast %10 : vector<1x8xf32> to vector<8x8xf32>
    %12 = arith.addf %9, %11 : vector<8x8xf32>
    %cst_8 = arith.constant 0.000000e+00 : f32
    %13 = vector.broadcast %cst_8 : f32 to vector<8x8xf32>
    %14 = arith.maximumf %12, %13 : vector<8x8xf32>
    %c96 = arith.constant 96 : index
    %c0_9 = arith.constant 0 : index
    %15 = vector.load %arg2[%c96, %c0_9] : memref<208x128xf32, #tpu.memory_space<vmem>>, vector<8x24xf32>
    %cst_10 = arith.constant dense<0.000000e+00> : vector<8x24xf32>
    %16 = tpu.matmul %14, %15, %cst_10 {dimension_numbers = #tpu.dot_dimension_numbers<[1], [0], [0], [1], [0, 0, 1, 1], [], []>} : vector<8x8xf32>, vector<8x24xf32>, vector<8x24xf32> -> vector<8x24xf32>
    %17 = vector.extract_strided_slice %16 {offsets = [0, 0], sizes = [8, 8], strides = [1, 1]} : vector<8x24xf32> to vector<8x8xf32>
    %c104 = arith.constant 104 : index
    %c0_11 = arith.constant 0 : index
    %18 = vector.load %arg2[%c104, %c0_11] : memref<208x128xf32, #tpu.memory_space<vmem>>, vector<1x8xf32>
    %19 = vector.broadcast %18 : vector<1x8xf32> to vector<8x8xf32>
    %20 = arith.addf %17, %19 : vector<8x8xf32>
    %cst_12 = arith.constant 0.000000e+00 : f32
    %21 = vector.broadcast %cst_12 : f32 to vector<8x8xf32>
    %22 = arith.maximumf %20, %21 : vector<8x8xf32>
    %c112 = arith.constant 112 : index
    %c0_13 = arith.constant 0 : index
    %23 = vector.load %arg2[%c112, %c0_13] : memref<208x128xf32, #tpu.memory_space<vmem>>, vector<8x8xf32>
    %cst_14 = arith.constant dense<0.000000e+00> : vector<8x8xf32>
    %24 = tpu.matmul %22, %23, %cst_14 {dimension_numbers = #tpu.dot_dimension_numbers<[1], [0], [0], [1], [0, 0, 1, 1], [], []>} : vector<8x8xf32>, vector<8x8xf32>, vector<8x8xf32> -> vector<8x8xf32>
    %c120 = arith.constant 120 : index
    %c0_15 = arith.constant 0 : index
    %25 = vector.load %arg2[%c120, %c0_15] : memref<208x128xf32, #tpu.memory_space<vmem>>, vector<1x8xf32>
    %26 = vector.broadcast %25 : vector<1x8xf32> to vector<8x8xf32>
    %27 = arith.addf %24, %26 : vector<8x8xf32>
    %cst_16 = arith.constant 0.000000e+00 : f32
    %28 = vector.broadcast %cst_16 : f32 to vector<8x8xf32>
    %29 = arith.maximumf %27, %28 : vector<8x8xf32>
    %c128 = arith.constant 128 : index
    %c0_17 = arith.constant 0 : index
    %30 = vector.load %arg2[%c128, %c0_17] : memref<208x128xf32, #tpu.memory_space<vmem>>, vector<8x2xf32>
    %cst_18 = arith.constant dense<0.000000e+00> : vector<8x2xf32>
    %31 = tpu.matmul %29, %30, %cst_18 {dimension_numbers = #tpu.dot_dimension_numbers<[1], [0], [0], [1], [0, 0, 1, 1], [], []>} : vector<8x8xf32>, vector<8x2xf32>, vector<8x2xf32> -> vector<8x2xf32>
    %c136 = arith.constant 136 : index
    %c0_19 = arith.constant 0 : index
    %32 = vector.load %arg2[%c136, %c0_19] : memref<208x128xf32, #tpu.memory_space<vmem>>, vector<1x2xf32>
    %33 = vector.broadcast %32 : vector<1x2xf32> to vector<8x2xf32>
    %34 = arith.addf %31, %33 : vector<8x2xf32>
    %cst_20 = arith.constant 0.000000e+00 : f32
    %35 = vector.broadcast %cst_20 : f32 to vector<8x2xf32>
    %36 = arith.maximumf %34, %35 : vector<8x2xf32>
    %c144 = arith.constant 144 : index
    %c0_21 = arith.constant 0 : index
    %37 = vector.load %arg2[%c144, %c0_21] : memref<208x128xf32, #tpu.memory_space<vmem>>, vector<2x16xf32>
    %cst_22 = arith.constant dense<0.000000e+00> : vector<8x16xf32>
    %38 = tpu.matmul %36, %37, %cst_22 {dimension_numbers = #tpu.dot_dimension_numbers<[1], [0], [0], [1], [0, 0, 1, 1], [], []>} : vector<8x2xf32>, vector<2x16xf32>, vector<8x16xf32> -> vector<8x16xf32>
    %39 = vector.extract_strided_slice %16 {offsets = [0, 8], sizes = [8, 8], strides = [1, 1]} : vector<8x24xf32> to vector<8x8xf32>
    %40 = vector.extract_strided_slice %38 {offsets = [0, 0], sizes = [8, 8], strides = [1, 1]} : vector<8x16xf32> to vector<8x8xf32>
    %41 = arith.addf %39, %40 : vector<8x8xf32>
    %c152 = arith.constant 152 : index
    %c0_23 = arith.constant 0 : index
    %42 = vector.load %arg2[%c152, %c0_23] : memref<208x128xf32, #tpu.memory_space<vmem>>, vector<1x8xf32>
    %43 = vector.broadcast %42 : vector<1x8xf32> to vector<8x8xf32>
    %44 = arith.addf %41, %43 : vector<8x8xf32>
    %cst_24 = arith.constant 0.000000e+00 : f32
    %45 = vector.broadcast %cst_24 : f32 to vector<8x8xf32>
    %46 = arith.maximumf %44, %45 : vector<8x8xf32>
    %c160 = arith.constant 160 : index
    %c0_25 = arith.constant 0 : index
    %47 = vector.load %arg2[%c160, %c0_25] : memref<208x128xf32, #tpu.memory_space<vmem>>, vector<8x3xf32>
    %cst_26 = arith.constant dense<0.000000e+00> : vector<8x3xf32>
    %48 = tpu.matmul %46, %47, %cst_26 {dimension_numbers = #tpu.dot_dimension_numbers<[1], [0], [0], [1], [0, 0, 1, 1], [], []>} : vector<8x8xf32>, vector<8x3xf32>, vector<8x3xf32> -> vector<8x3xf32>
    %c168 = arith.constant 168 : index
    %c0_27 = arith.constant 0 : index
    %49 = vector.load %arg2[%c168, %c0_27] : memref<208x128xf32, #tpu.memory_space<vmem>>, vector<1x3xf32>
    %50 = vector.broadcast %49 : vector<1x3xf32> to vector<8x3xf32>
    %51 = arith.addf %48, %50 : vector<8x3xf32>
    %cst_28 = arith.constant 0.000000e+00 : f32
    %52 = vector.broadcast %cst_28 : f32 to vector<8x3xf32>
    %53 = arith.maximumf %51, %52 : vector<8x3xf32>
    %54 = vector.extract_strided_slice %16 {offsets = [0, 16], sizes = [8, 8], strides = [1, 1]} : vector<8x24xf32> to vector<8x8xf32>
    %55 = vector.extract_strided_slice %38 {offsets = [0, 8], sizes = [8, 8], strides = [1, 1]} : vector<8x16xf32> to vector<8x8xf32>
    %56 = arith.addf %54, %55 : vector<8x8xf32>
    %c176 = arith.constant 176 : index
    %c0_29 = arith.constant 0 : index
    %57 = vector.load %arg2[%c176, %c0_29] : memref<208x128xf32, #tpu.memory_space<vmem>>, vector<3x8xf32>
    %cst_30 = arith.constant dense<0.000000e+00> : vector<8x8xf32>
    %58 = tpu.matmul %53, %57, %cst_30 {dimension_numbers = #tpu.dot_dimension_numbers<[1], [0], [0], [1], [0, 0, 1, 1], [], []>} : vector<8x3xf32>, vector<3x8xf32>, vector<8x8xf32> -> vector<8x8xf32>
    %59 = arith.addf %56, %58 : vector<8x8xf32>
    %c184 = arith.constant 184 : index
    %c0_31 = arith.constant 0 : index
    %60 = vector.load %arg2[%c184, %c0_31] : memref<208x128xf32, #tpu.memory_space<vmem>>, vector<1x8xf32>
    %61 = vector.broadcast %60 : vector<1x8xf32> to vector<8x8xf32>
    %62 = arith.addf %59, %61 : vector<8x8xf32>
    %cst_32 = arith.constant 0.000000e+00 : f32
    %63 = vector.broadcast %cst_32 : f32 to vector<8x8xf32>
    %64 = arith.maximumf %62, %63 : vector<8x8xf32>
    %c192 = arith.constant 192 : index
    %c0_33 = arith.constant 0 : index
    %65 = vector.load %arg2[%c192, %c0_33] : memref<208x128xf32, #tpu.memory_space<vmem>>, vector<8x4xf32>
    %cst_34 = arith.constant dense<0.000000e+00> : vector<8x4xf32>
    %66 = tpu.matmul %64, %65, %cst_34 {dimension_numbers = #tpu.dot_dimension_numbers<[1], [0], [0], [1], [0, 0, 1, 1], [], []>} : vector<8x8xf32>, vector<8x4xf32>, vector<8x4xf32> -> vector<8x4xf32>
    %c200 = arith.constant 200 : index
    %c0_35 = arith.constant 0 : index
    %67 = vector.load %arg2[%c200, %c0_35] : memref<208x128xf32, #tpu.memory_space<vmem>>, vector<1x4xf32>
    %68 = vector.broadcast %67 : vector<1x4xf32> to vector<8x4xf32>
    %69 = arith.addf %66, %68 : vector<8x4xf32>
    %cst_36 = arith.constant 0.000000e+00 : f32
    %70 = vector.broadcast %cst_36 : f32 to vector<8x4xf32>
    %71 = arith.maximumf %69, %70 : vector<8x4xf32>
    %72 = tpu.concatenate %36, %53, %71 in 1 : vector<8x2xf32>, vector<8x3xf32>, vector<8x4xf32> -> vector<8x9xf32>
    %c0_37 = arith.constant 0 : index
    %c0_38 = arith.constant 0 : index
    %73 = vector.load %arg3[%c0_37, %c0_38] : memref<8x9xf32, #tpu.memory_space<vmem>>, vector<8x9xf32>
    tpu.vector_store %arg3[%c0_37, %c0_38], %72 {strides = array<i32>} : memref<8x9xf32, #tpu.memory_space<vmem>>, vector<8x9xf32>,
    return
  }
  func.func @transform_0(%arg0: i32) -> (i32, i32) {
    %c0_i32 = arith.constant 0 : i32
    %c0_i32_0 = arith.constant 0 : i32
    return %arg0, %c0_i32 : i32, i32
  }
  func.func @transform_1(%arg0: i32) -> (i32, i32) {
    %c0_i32 = arith.constant 0 : i32
    %c0_i32_0 = arith.constant 0 : i32
    %c0_i32_1 = arith.constant 0 : i32
    return %c0_i32, %c0_i32_0 : i32, i32
  }
  func.func @transform_2(%arg0: i32) -> (i32, i32) {
    %c0_i32 = arith.constant 0 : i32
    %c0_i32_0 = arith.constant 0 : i32
    return %arg0, %c0_i32 : i32, i32
  }
}

</mosaic_0001>

<bundles_post_ra>
// kernel: tpu_custom_call.1
= control target key start
LH: loop header
LB: loop body
LE: loop exit
PB: predicated region body
PF: predicated region fallthrough
CT: control target
= control target key end

     0   :  { %7 = vsyncpa [#allocation3], 0  ;;  %s1106_s0 = inlined_call_operand.hbm [shape: f32[8,16], index: 0, kind: input, shape index: {}]   ;;  %s1107_s1 = inlined_call_operand.hbm [shape: f32[208,128], index: 1, kind: input, shape index: {}]   ;;  %s1108_s2 = inlined_call_operand.hbm [shape: f32[8,9], index: 2, kind: output, shape index: {}]  }
   0x1   :  { %8 = vsyncpa [#allocation6], 0 }
   0x2   :  { %9 = vsyncpa [#allocation4], 0  ;;  %s1018_s9 = smov [#allocation2]   ;;  %s1019_s11 = smov [#allocation5]  }
   0x3   :  { %s16_s10 = sshll.u32 %s1018_s9, 4  ;;  %s25_s12 = sshll.u32 %s1019_s11, 4  ;;  %s17_s10 = int_to_ptr.vmem [resolvable:$true] %s16_s10  ;;  %s26_s12 = int_to_ptr.vmem [resolvable:$true] %s25_s12 }
   0x4   :  { %s960_s13 = scalar_lea.vmem %s17_s10, 128  ;;  %p965_p1 = scmp.lt.s32.totalorder %s17_s10, %s17_s10 }
   0x5   :  { %p961_p0 = scmp.ne.s32.totalorder %s17_s10, %s960_s13  ;;  %p966_p2 = scmp.lt.s32.totalorder %s960_s13, %s960_s13 }
   0x7   :  { %p967_p3 = por %p966_p2, %p965_p1 }
   0x9   :  { %p968_p4 = pnand %p967_p3, %p961_p0 }
   0xb   :  { %971 = shalt.err (!%p968_p4)
}
   0xc   :  { %19 = dma.hbm_to_vmem [thread:$0]  %s1106_s0, 128, %s17_s10, [#allocation3]  }
   0xd   :  { %s980_s16 = scalar_lea.vmem %s26_s12, 3328  ;;  %p985_p6 = scmp.lt.s32.totalorder %s26_s12, %s26_s12 }
   0xe   :  { %p981_p5 = scmp.ne.s32.totalorder %s26_s12, %s980_s16  ;;  %p986_p7 = scmp.lt.s32.totalorder %s980_s16, %s980_s16 }
  0x10   :  { %p987_p8 = por %p986_p7, %p985_p6 }
  0x12   :  { %p988_p9 = pnand %p987_p8, %p981_p5 }
  0x14   :  { %991 = shalt.err (!%p988_p9)
}
  0x15   :  { %s1020_s17 = smov 128   ;;  %s1021_s18 = smov 8  }
  0x16   :  { %31 = dma.hbm_to_vmem [thread:$0]  %s1107_s1, 3328, %s26_s12, [#allocation6], %s1020_s17, %s1020_s17, %s1021_s18  }
  0x17   :  { %1012 = dma.done.wait [#allocation3], 128  }
  0x18   :  { %1013 = vsyncadd [#allocation3], 4294967168 }
  0x19   :  { %1014 = dma.done.wait [#allocation6], 3328  }
  0x1a   :  { %1015 = vsyncadd [#allocation6], 4294963968  ;;  %v1022_v0 = vmov 0.0   ;;  %vm1023_vm0 = vmmov 0   ;;  %v40_v1 = vld [vmem:[#allocation5 + $0x8] sm:$0xff]  ;;  %v39_v2 = vld [vmem:[#allocation5] sm:$0xff] }
  0x1b   :  { %879 = vmatprep.subr.mxu0 %v1022_v0  ;;  %883 = vmatprep.mubr.msk.f32.mxu0 %vm1023_vm0, %v1022_v0  ;;  %v38_v3 = vld [vmem:[#allocation2] sm:$0xff]  ;;  %vm46_vm1 = vcmask 130048   ;;  %v128_v4 = vld [vmem:[#allocation5 + $0x50] sm:$0xff]  ;;  %v127_v5 = vld [vmem:[#allocation5 + $0x48] sm:$0xff]  ;;  %vm134_vm2 = vcmask 523264   ;;  %vm210_vm3 = vcmask 64512  }
  0x1c   :  { %886 = vmatprep.subr.mxu1 %v1022_v0  ;;  %902 = vmatprep.mubr.msk.f32.mxu1 %vm1023_vm0, %v1022_v0  ;;  %v126_v6 = vld [vmem:[#allocation5 + $0x40] sm:$0xff]  ;;  %v125_v7 = vld [vmem:[#allocation5 + $0x38] sm:$0xff]  ;;  %v124_v8 = vld [vmem:[#allocation5 + $0x30] sm:$0xff]  ;;  %vm456_vm4 = vcmask 1041408   ;;  %vm452_vm5 = vcmask 15360   ;;  %s1024_s0 = smov 120  }
  0x1d   :  { %880 = vmatpush3.msra.mxu0 %v40_v1  ;;  %887 = vmatpush3.msra.mxu1 %v128_v4  ;;  %v123_v9 = vld [vmem:[#allocation5 + $0x28] sm:$0xff]  ;;  %v122_v10 = vld [vmem:[#allocation5 + $0x20] sm:$0xff]  ;;  %v121_v11 = vld [vmem:[#allocation5 + $0x18] sm:$0xff]  ;;  %s1025_s1 = smov 16   ;;  %vm633_vm6 = vcmask 1042432   ;;  %vm629_vm7 = vcmask 23552  }
  0x1e   :  { %881 = vmatprep.subr.mxu0 %v1022_v0  ;;  %888 = vmatprep.subr.mxu1 %v1022_v0  ;;  %v833_v12 = vld [vmem:[#allocation5 + $0x10] ss:$0 sm:$0xff]  ;;  %v209_v17 = vld [vmem:[#allocation5 + $0x60] sm:$0xff]  ;;  %v835_v18 = vld [vmem:[#allocation5 + $0x58] ss:$0 sm:$0xff]  ;;  %s1026_s21 = smov 2  }
  0x1f   :  { %882 = vmatpush3.msra.mxu0 %v39_v2  ;;  %889 = vmatpush3.msra.mxu1 %v127_v5  ;;  %v291_v23 = vld [vmem:[#allocation5 + $0x70] sm:$0xff]  ;;  %v838_v24 = vld [vmem:[#allocation5 + $0x68] ss:$0 sm:$0xff]  ;;  %v371_v29 = vld [vmem:[#allocation5 + $0x80] sm:$0xff]  ;;  %s1027_s22 = smov 112   ;;  %s1028_s23 = smov 5  }
  0x20   :  { %884 = vmatmul.mubr.msk.f32.vlgmr.msra.gmra.mxu0 %vm46_vm1, %v38_v3  ;;  %890 = vmatprep.subr.mxu1 %v1022_v0  ;;  %v839_v30 = vld [vmem:[#allocation5 + $0x78] ss:$0 sm:$0xff]  ;;  %v451_v35 = vld [vmem:[#allocation5 + $0x90] sm:$0x3]  ;;  %v841_v36 = vld [vmem:[#allocation5 + $0x88] ss:$0 sm:$0xff] }
  0x21   :  { %905 = vmatprep.subr.mxu0 %v1022_v0  ;;  %891 = vmatpush3.msra.mxu1 %v126_v6  ;;  %v546_v41 = vld [vmem:[#allocation5 + $0xa0] sm:$0xff]  ;;  %v845_v44 = vld [vmem:[#allocation5 + $0x98] ss:$0 sm:$0xff]  ;;  %v628_v52 = vld [vmem:[#allocation5 + $0xb0] sm:$0x7]  ;;  %s1029_s24 = smov [#allocation7]  }
  0x22   :  { %907 = vmatprep.mubr.msk.f32.mxu0 %vm1023_vm0, %v1022_v0  ;;  %892 = vmatprep.subr.mxu1 %v1022_v0  ;;  %v850_v51 = vld [vmem:[#allocation5 + $0xb8] ss:$0 sm:$0xff]  ;;  %v846_v53 = vld [vmem:[#allocation5 + $0xa8] ss:$0 sm:$0xff]  ;;  %v723_v58 = vld [vmem:[#allocation5 + $0xc0] sm:$0xff]  ;;  %s823_s25 = sshll.u32 %s1029_s24, 4  ;;  %s824_s25 = int_to_ptr.vmem [resolvable:$true] %s823_s25 }
  0x23   :  { %893 = vmatpush3.msra.mxu1 %v125_v7  ;;  %906 = vmatpush3.msra.mxu0 %v209_v17  ;;  %v851_v3 = vld [vmem:[#allocation5 + $0xc8] ss:$0 sm:$0xff]  ;;  %vm813_vm8 = vcmask 39936   ;;  %vm815_vm9 = vcmask 72704   ;;  %s992_s26 = scalar_lea.vmem %s824_s25, 128  ;;  %p997_p11 = scmp.lt.s32.totalorder %s824_s25, %s824_s25 }
  0x24   :  { %894 = vmatprep.subr.mxu1 %v1022_v0  ;;  %910 = vmatprep.subr.mxu0 %v1022_v0  ;;  %p993_p10 = scmp.ne.s32.totalorder %s824_s25, %s992_s26  ;;  %p998_p12 = scmp.lt.s32.totalorder %s992_s26, %s992_s26 }
  0x25   :  { %895 = vmatpush3.msra.mxu1 %v124_v8 }
  0x26   :  { %896 = vmatprep.subr.mxu1 %v1022_v0  ;;  %p999_p13 = por %p998_p12, %p997_p11 }
  0x27   :  { %897 = vmatpush3.msra.mxu1 %v123_v9 }
  0x28   :  { %898 = vmatprep.subr.mxu1 %v1022_v0  ;;  %p1000_p0 = pnand %p999_p13, %p993_p10 }
  0x29   :  { %899 = vmatpush3.msra.mxu1 %v122_v10 }
  0x2a   :  { %900 = vmatprep.subr.mxu1 %v1022_v0 }
  0x2b   :  { %901 = vmatpush3.msra.mxu1 %v121_v11 }
  0x2c   :  { %925 = vmatprep.subr.mxu1 %v1022_v0 }
  0xe0   :  { %v116_v13 = vpop.f32.mrf.mxu0 }
  0xe1   :  { %v117_v14 = vadd.f32 %v833_v12, %v116_v13 }
  0xe2   :  { %v885_v15 = vpop.f32.mrf.mxu0 }
  0xe3   :  { %v120_v16 = vmax.f32 %v117_v14, 0.0 }
  0xe5   :  { %903 = vmatmul.mubr.msk.f32.vlgmr.msra.gmra.mxu1 %vm134_vm2, %v120_v16 }
  0xe6   :  { %927 = vmatprep.mubr.msk.f32.mxu1 %vm1023_vm0, %v1022_v0  ;;  %926 = vmatpush3.msra.mxu1 %v546_v41 }
  0xe7   :  { %935 = vmatprep.subr.mxu1 %v1022_v0 }
 0x1a5   :  { %v204_v19 = vpop.f32.mrf.mxu1 }
 0x1a6   :  { %v205_v20 = vadd.f32 %v835_v18, %v204_v19 }
 0x1a7   :  { %v904_v21 = vpop.f32.mrf.mxu1 }
 0x1a8   :  { %v208_v22 = vmax.f32 %v205_v20, 0.0 }
 0x1aa   :  { %908 = vmatmul.mubr.msk.f32.vlgmr.msra.gmra.mxu0 %vm210_vm3, %v208_v22 }
 0x1ab   :  { %912 = vmatprep.mubr.msk.f32.mxu0 %vm1023_vm0, %v1022_v0  ;;  %911 = vmatpush3.msra.mxu0 %v291_v23 }
 0x1ac   :  { %915 = vmatprep.subr.mxu0 %v1022_v0 }
 0x26a   :  { %v280_v25 = vpop.f32.mrf.mxu0 }
 0x26b   :  { %v289_v26 = vadd.f32 %v838_v24, %v280_v25 }
 0x26c   :  { %v909_v27 = vpop.f32.mrf.mxu0 }
 0x26d   :  { %v290_v28 = vmax.f32 %v289_v26, 0.0 }
 0x26f   :  { %913 = vmatmul.mubr.msk.f32.vlgmr.msra.gmra.mxu0 %vm210_vm3, %v290_v28 }
 0x270   :  { %917 = vmatprep.mubr.msk.f32.mxu0 %vm1023_vm0, %v1022_v0  ;;  %916 = vmatpush3.msra.mxu0 %v371_v29 }
 0x271   :  { %920 = vmatprep.subr.mxu0 %v1022_v0 }
 0x32f   :  { %v366_v31 = vpop.f32.mrf.mxu0 }
 0x330   :  { %v367_v32 = vadd.f32 %v839_v30, %v366_v31 }
 0x331   :  { %v914_v33 = vpop.f32.mrf.mxu0 }
 0x332   :  { %v370_v34 = vmax.f32 %v367_v32, 0.0 }
 0x334   :  { %918 = vmatmul.mubr.msk.f32.vlgmr.msra.gmra.mxu0 %vm210_vm3, %v370_v34 }
 0x335   :  { %922 = vmatprep.mubr.msk.f32.mxu0 %vm1023_vm0, %v1022_v0  ;;  %921 = vmatpush3.msk.msra.mxu0 %vm456_vm4, %v451_v35 }
 0x336   :  { %930 = vmatprep.subr.mxu0 %v1022_v0 }
 0x3f4   :  { %v446_v37 = vpop.f32.mrf.mxu0 }
 0x3f5   :  { %v1085_v38 = vadd.f32 %v841_v36, %v446_v37 }
 0x3f6   :  { %v919_v39 = vpop.f32.mrf.mxu0 }
 0x3f7   :  { %v450_v40 = vmax.f32 %v1085_v38, 0.0 }
 0x3f9   :  { %923 = vmatmul.mubr.msk.f32.vlgmr.msra.gmra.mxu0 %vm452_vm5, %v450_v40 }
 0x3fa   :  { %932 = vmatprep.mubr.msk.f32.mxu0 %vm1023_vm0, %v1022_v0  ;;  %931 = vmatpush3.msk.msra.mxu0 %vm633_vm6, %v628_v52 }
 0x4b9   :  { %v526_v42 = vpop.f32.mrf.mxu0 }
 0x4ba   :  { %531 = vrot.lane.b32.xlu0 %v526_v42, %s1021_s18 }
 0x4bb   :  { %v924_v43 = vpop.f32.mrf.mxu0 }
 0x4be   :  { %541 = vrot.lane.b32.xlu0 %v845_v44, %s1021_s18 }
 0x4c2   :  { %718 = vrot.lane.b32.xlu0 %v850_v51, %s1025_s1 }
 0x52c   :  { %v532_v45 = vpop.permute.xlu0 %531 }
 0x52d   :  { %v534_v46 = vadd.f32 %v532_v45, %v280_v25 }
 0x530   :  { %v542_v47 = vpop.permute.xlu0 %541 }
 0x531   :  { %v544_v48 = vadd.f32 %v542_v47, %v534_v46 }
 0x533   :  { %v545_v49 = vmax.f32 %v544_v48, 0.0 }
 0x534   :  { %v719_v63 = vpop.permute.xlu0 %718 }
 0x535   :  { %553 = vrot.lane.b32.xlu1 %v545_v49, %s1024_s0 }
 0x5a7   :  { %v554_v50 = vpop.permute.xlu1 %553 }
 0x5a8   :  { %928 = vmatmul.mubr.msk.f32.vlgmr.msra.gmra.mxu1 %vm210_vm3, %v554_v50 }
 0x5a9   :  { %937 = vmatprep.mubr.msk.f32.mxu1 %vm1023_vm0, %v1022_v0  ;;  %936 = vmatpush3.msra.mxu1 %v723_v58 }
 0x668   :  { %v623_v54 = vpop.f32.mrf.mxu1 }
 0x669   :  { %v624_v55 = vadd.f32 %v846_v53, %v623_v54 }
 0x66a   :  { %v929_v56 = vpop.f32.mrf.mxu1 }
 0x66b   :  { %v627_v57 = vmax.f32 %v624_v55, 0.0 }
 0x66d   :  { %805 = vrot.lane.b32.xlu0 %v627_v57, %s1026_s21  ;;  %933 = vmatmul.mubr.msk.f32.vlgmr.msra.gmra.mxu0 %vm629_vm7, %v627_v57 }
 0x6df   :  { %v806_v8 = vpop.permute.xlu0 %805 }
 0x6e0   :  { %v812_v9 = vsel %vm452_vm5, %v450_v40, %v806_v8 }
 0x72d   :  { %v703_v59 = vpop.f32.mrf.mxu0 }
 0x72e   :  { %708 = vrot.lane.b32.xlu1 %v703_v59, %s1025_s1 }
 0x72f   :  { %v934_v60 = vpop.f32.mrf.mxu0 }
 0x7a0   :  { %v709_v61 = vpop.permute.xlu1 %708 }
 0x7a1   :  { %v711_v62 = vadd.f32 %v709_v61, %v534_v46 }
 0x7a3   :  { %v721_v0 = vadd.f32 %v719_v63, %v711_v62 }
 0x7a5   :  { %v722_v1 = vmax.f32 %v721_v0, 0.0 }
 0x7a7   :  { %730 = vrot.lane.b32.xlu1 %v722_v1, %s1027_s22 }
 0x819   :  { %v731_v2 = vpop.permute.xlu1 %730 }
 0x81a   :  { %938 = vmatmul.mubr.msk.f32.vlgmr.msra.gmra.mxu1 %vm210_vm3, %v731_v2 }
 0x8da   :  { %v800_v4 = vpop.f32.mrf.mxu1 }
 0x8db   :  { %v801_v5 = vadd.f32 %v851_v3, %v800_v4 }
 0x8dc   :  { %v939_v6 = vpop.f32.mrf.mxu1 }
 0x8dd   :  { %v804_v7 = vmax.f32 %v801_v5, 0.0 }
 0x8df   :  { %809 = vrot.lane.b32.xlu1 %v804_v7, %s1028_s23 }
 0x951   :  { %v810_v10 = vpop.permute.xlu1 %809 }
 0x952   :  { %v814_v11 = vsel %vm813_vm8, %v812_v9, %v810_v10 }
 0x953   :  { %816 = vst.msk [vmem:[#allocation7] sm:$0xff] %vm815_vm9, %v814_v11 }
 0x954   :  { %1003 = shalt.err (!%p1000_p0)
}
 0x955   :  { %826 = dma.vmem_to_hbm [thread:$0]  %s824_s25, 128, %s1108_s2, [#allocation4]  }
 0x956   :  { %1016 = dma.done.wait [#allocation4], 128  }
 0x957   :  { %1017 = vsyncadd [#allocation4], 4294967168 }
 0x958   :  { %830 = vsyncpa [#allocation3], 1 }
 0x959   :  { %831 = vsyncpa [#allocation6], 1 }
 0x95a   :  { %832 = vsyncpa [#allocation4], 1 }

</bundles_post_ra>
